<compile_context>
chip_gen: v7x
topology: tpu7x:2x2x1
jax: 0.10.0
libtpu: 0.0.40
codegen_flags: <defaults>
</compile_context>

<pallas_src>
import functools
import math

import jax
import jax.numpy as jnp
from jax.experimental import pallas as pl
from jax.experimental.pallas import tpu as pltpu


# ---------------------------------------------------------------------------
# Parameter ("buffer") setup — mirrors PositionalEncoding.__init__
# ---------------------------------------------------------------------------
def make_pe_table(d_model: int, max_len: int) -> jnp.ndarray:
    """Builds pe of shape [max_len, 1, d_model] exactly like the torch module."""
    position = jnp.arange(0, max_len, dtype=jnp.float32)[:, None]          # [max_len, 1]
    div_term = jnp.exp(
        jnp.arange(0, d_model, 2, dtype=jnp.float32) * (-math.log(10000.0) / d_model)
    )                                                                       # [d_model/2]
    pe = jnp.zeros((max_len, d_model), dtype=jnp.float32)
    pe = pe.at[:, 0::2].set(jnp.sin(position * div_term))
    pe = pe.at[:, 1::2].set(jnp.cos(position * div_term))
    return pe[:, None, :]                                                   # [max_len, 1, d_model]


# ---------------------------------------------------------------------------
# Pallas kernels
# ---------------------------------------------------------------------------
def pe_add_kernel(x_ref, pe_ref, o_ref):
    # x_ref: (TS, B, D), pe_ref: (TS, 1, D) -> broadcast over batch.
    o_ref[...] = x_ref[...] + pe_ref[...]


def pe_add_dropout_kernel(x_ref, pe_ref, bits_ref, o_ref, *, threshold_u32, scale):
    # Inverted dropout with integer-domain threshold:
    #   keep iff bits >= p * 2^32  (keep prob = 1 - p), kept values scaled 1/(1-p).
    y = x_ref[...] + pe_ref[...]
    keep = bits_ref[...] >= jnp.uint32(threshold_u32)
    o_ref[...] = jnp.where(keep, y * jnp.float32(scale), jnp.zeros_like(y))


# ---------------------------------------------------------------------------
# Wrapper
# ---------------------------------------------------------------------------
def _seq_tile(seq_len: int, batch: int, d_model: int, itemsize: int,
              target_bytes: int = 1 << 20) -> int:
    """Rows of the seq axis per tile so an x tile is ~1 MiB (VMEM-safe on all gens)."""
    rows = max(1, target_bytes // max(1, batch * d_model * itemsize))
    return int(min(seq_len, rows))


def positional_encoding_forward(x, pe_table, *, dropout_p=0.1, training=False,
                                rng_key=None):
    """x: [seq_len, batch, d_model]; returns same shape/dtype."""
    S, B, D = x.shape
    pe_slice = pe_table[:S].astype(x.dtype)                 # [S, 1, D]
    # NOTE: for production sizes keep D a multiple of 128 (lane-dense stores).

    ts = _seq_tile(S, B, D, x.dtype.itemsize)
    grid = (pl.cdiv(S, ts),)
    x_spec = pl.BlockSpec((ts, B, D), lambda i: (i, 0, 0))
    pe_spec = pl.BlockSpec((ts, 1, D), lambda i: (i, 0, 0))  # indexed by seq axis only
    out_spec = pl.BlockSpec((ts, B, D), lambda i: (i, 0, 0))
    cparams = pltpu.CompilerParams(dimension_semantics=("parallel",))

    if not training or dropout_p == 0.0:
        # nn.Dropout is identity in eval mode.
        return pl.pallas_call(
            pe_add_kernel,
            out_shape=jax.ShapeDtypeStruct((S, B, D), x.dtype),
            grid=grid,
            in_specs=[x_spec, pe_spec],
            out_specs=out_spec,
            input_output_aliases={0: 0},
            compiler_params=cparams,
        )(x, pe_slice)

    if rng_key is None:
        rng_key = jax.random.PRNGKey(0)
    bits = jax.random.bits(rng_key, (S, B, D), dtype=jnp.uint32)
    threshold = min(int(round(float(dropout_p) * float(1 << 32))), (1 << 32) - 1)
    scale = 1.0 / (1.0 - float(dropout_p))
    kernel = functools.partial(pe_add_dropout_kernel,
                               threshold_u32=threshold, scale=scale)
    return pl.pallas_call(
        kernel,
        out_shape=jax.ShapeDtypeStruct((S, B, D), x.dtype),
        grid=grid,
        in_specs=[x_spec, pe_spec, x_spec],                  # bits tiled like x
        out_specs=out_spec,
        input_output_aliases={0: 0},
        compiler_params=cparams,
    )(x, pe_slice, bits)


# ---------------------------------------------------------------------------
# Main
# ---------------------------------------------------------------------------
if __name__ == "__main__":
    d_model = 32
    max_len = 64          # small max_len for the synthetic test (module default 5000)
    seq_len = 8
    batch = 2
    dropout_p = 0.1

    key = jax.random.PRNGKey(0)
    k_x, k_drop = jax.random.split(key)
    x = jax.random.normal(k_x, (seq_len, batch, d_model), dtype=jnp.float32)

    pe_table = make_pe_table(d_model, max_len)

    # Pure-JAX reference (computed before any kernel call).
    ref = x + pe_table[:seq_len]

    # Eval-mode forward (dropout = identity).
    out_eval = positional_encoding_forward(x, pe_table, dropout_p=dropout_p,
                                           training=False)
    out_eval = jax.block_until_ready(out_eval)
    assert out_eval.shape == (seq_len, batch, d_model)
    assert jnp.allclose(out_eval, ref, atol=1e-6, rtol=1e-6)

    # Training-mode forward (inverted dropout).
    out_train = positional_encoding_forward(x, pe_table, dropout_p=dropout_p,
                                            training=True, rng_key=k_drop)
    out_train = jax.block_until_ready(out_train)
    assert out_train.shape == (seq_len, batch, d_model)

    scaled_ref = ref / (1.0 - dropout_p)
    kept = out_train != 0.0
    # Kept elements equal ref / (1-p); dropped elements are exactly zero.
    assert jnp.allclose(jnp.where(kept, out_train, scaled_ref), scaled_ref,
                        atol=1e-5, rtol=1e-5)
    # Keep-rate sanity check (expected ~0.9, very loose bounds).
    keep_rate = jnp.mean(kept.astype(jnp.float32))
    assert 0.7 <= float(keep_rate) <= 1.0

    print("KERNEL_OK")
</pallas_src>

<mosaic_0001>
module attributes {stable_mosaic.version = 11 : i64} {
  func.func @pe_add_kernel(%arg0: i32, %arg1: memref<8x2x32xf32, #tpu.memory_space<vmem>>, %arg2: memref<8x1x32xf32, #tpu.memory_space<vmem>>, %arg3: memref<8x2x32xf32, #tpu.memory_space<vmem>>) attributes {dimension_semantics = [#tpu.dimension_semantics<parallel>], iteration_bounds = array<i64: 1>, scalar_prefetch = 0 : i64, scratch_operands = 0 : i64, tpu.core_type = #tpu.core_type<tc>, window_params = [{transform_indices = @transform_0, window_bounds = array<i64: 8, 2, 32>}, {transform_indices = @transform_1, window_bounds = array<i64: 8, 1, 32>}, {transform_indices = @transform_2, window_bounds = array<i64: 8, 2, 32>}]} {
    %c0 = arith.constant 0 : index
    %c0_0 = arith.constant 0 : index
    %c0_1 = arith.constant 0 : index
    %0 = vector.load %arg1[%c0, %c0_0, %c0_1] : memref<8x2x32xf32, #tpu.memory_space<vmem>>, vector<8x2x32xf32>
    %c0_2 = arith.constant 0 : index
    %c0_3 = arith.constant 0 : index
    %c0_4 = arith.constant 0 : index
    %1 = vector.load %arg2[%c0_2, %c0_3, %c0_4] : memref<8x1x32xf32, #tpu.memory_space<vmem>>, vector<8x1x32xf32>
    %2 = vector.broadcast %1 : vector<8x1x32xf32> to vector<8x2x32xf32>
    %3 = arith.addf %0, %2 : vector<8x2x32xf32>
    %c0_5 = arith.constant 0 : index
    %c0_6 = arith.constant 0 : index
    %c0_7 = arith.constant 0 : index
    %4 = vector.load %arg3[%c0_5, %c0_6, %c0_7] : memref<8x2x32xf32, #tpu.memory_space<vmem>>, vector<8x2x32xf32>
    tpu.vector_store %arg3[%c0_5, %c0_6, %c0_7], %3 {strides = array<i32>} : memref<8x2x32xf32, #tpu.memory_space<vmem>>, vector<8x2x32xf32>,
    return
  }
  func.func @transform_0(%arg0: i32) -> (i32, i32, i32) {
    %c0_i32 = arith.constant 0 : i32
    %c0_i32_0 = arith.constant 0 : i32
    %c0_i32_1 = arith.constant 0 : i32
    return %arg0, %c0_i32, %c0_i32_0 : i32, i32, i32
  }
  func.func @transform_1(%arg0: i32) -> (i32, i32, i32) {
    %c0_i32 = arith.constant 0 : i32
    %c0_i32_0 = arith.constant 0 : i32
    %c0_i32_1 = arith.constant 0 : i32
    return %arg0, %c0_i32, %c0_i32_0 : i32, i32, i32
  }
  func.func @transform_2(%arg0: i32) -> (i32, i32, i32) {
    %c0_i32 = arith.constant 0 : i32
    %c0_i32_0 = arith.constant 0 : i32
    %c0_i32_1 = arith.constant 0 : i32
    return %arg0, %c0_i32, %c0_i32_0 : i32, i32, i32
  }
}

</mosaic_0001>

<bundles_post_ra>
// kernel: tpu_custom_call.1
= control target key start
LH: loop header
LB: loop body
LE: loop exit
PB: predicated region body
PF: predicated region fallthrough
CT: control target
= control target key end

     0   :  { %7 = vsyncpa [#allocation3], 0  ;;  %s268_s0 = inlined_call_operand.hbm [shape: f32[8,2,32], index: 0, kind: input, shape index: {}, may-alias: {0,2}]   ;;  %s269_s1 = inlined_call_operand.vmem [shape: f32[8,1,32], index: 1, kind: input, shape index: {}]   ;;  %s270_s2 = inlined_call_operand.hbm [shape: f32[8,2,32], index: 2, kind: output, shape index: {}, may-alias: {0,2}]  }
   0x1   :  { %8 = vsyncpa [#allocation4], 0  ;;  %s184_s9 = smov [#allocation2]   ;;  %s136_s13 = scalar_lea.hbm %s268_s0, 256 }
   0x2   :  { %s14_s10 = sshll.u32 %s184_s9, 4  ;;  %p137_p0 = scmp.ne.s32.totalorder %s268_s0, %s136_s13  ;;  %s15_s10 = int_to_ptr.vmem [resolvable:$true] %s14_s10 }
   0x3   :  { %p140_p1 = scmp.lt.u32.totalorder %s136_s13, %s268_s0 }
   0x5   :  { %p142_p2 = pnand %p140_p1, %p137_p0 }
   0x7   :  { %145 = shalt.err (!%p142_p2)
}
   0x8   :  { %s146_s18 = scalar_lea.vmem %s15_s10, 256  ;;  %p151_p4 = scmp.lt.s32.totalorder %s15_s10, %s15_s10 }
   0x9   :  { %p147_p3 = scmp.ne.s32.totalorder %s15_s10, %s146_s18  ;;  %p152_p5 = scmp.lt.s32.totalorder %s146_s18, %s146_s18 }
   0xb   :  { %p153_p6 = por %p152_p5, %p151_p4 }
   0xd   :  { %p154_p7 = pnand %p153_p6, %p147_p3 }
   0xf   :  { %157 = shalt.err (!%p154_p7)
}
  0x10   :  { %s185_s19 = smov 32   ;;  %s186_s20 = smov 2  }
  0x11   :  { %20 = dma.hbm_to_vmem [thread:$0]  %s268_s0, 256, %s15_s10, [#allocation3], %s185_s19, %s185_s19, %s186_s20  }
  0x12   :  { %180 = dma.done.wait [#allocation3], 256  }
  0x13   :  { %181 = vsyncadd [#allocation3], 4294967040  ;;  %vm98_vm0 = vcmask 254976   ;;  %s187_s23 = smov [#allocation5]   ;;  %v26_v0 = vld [vmem:[#allocation2] sm:$0x3] }
  0x14   :  { %s218_s24 = sshll.u32 %s187_s23, 4  ;;  %v124_v1 = vld [vmem:[%s269_s1] ss:$0 sm:$0xff]  ;;  %v27_v2 = vld [vmem:[#allocation2 + $0x2] sm:$0x3]  ;;  %s113_s24 = int_to_ptr.vmem [resolvable:$true] %s218_s24 }
  0x15   :  { %v90_v3 = vadd.f32 %v124_v1, %v26_v0  ;;  %v125_v4 = vld [vmem:[%s269_s1 + $0x1] ss:$0 sm:$0xff]  ;;  %v28_v5 = vld [vmem:[#allocation2 + $0x4] sm:$0x3]  ;;  %v126_v6 = vld [vmem:[%s269_s1 + $0x2] ss:$0 sm:$0xff]  ;;  %p163_p9 = scmp.lt.s32.totalorder %s113_s24, %s113_s24 }
  0x16   :  { %v91_v7 = vadd.f32 %v125_v4, %v27_v2  ;;  %v92_v8 = vadd.f32 %v126_v6, %v28_v5  ;;  %v29_v9 = vld [vmem:[#allocation2 + $0x6] sm:$0x3]  ;;  %v127_v10 = vld [vmem:[%s269_s1 + $0x3] ss:$0 sm:$0xff]  ;;  %v30_v11 = vld [vmem:[#allocation2 + $0x8] sm:$0x3] }
  0x17   :  { %99 = vst.msk [vmem:[#allocation5] sm:$0x3] %vm98_vm0, %v90_v3  ;;  %v93_v12 = vadd.f32 %v127_v10, %v29_v9  ;;  %v128_v13 = vld [vmem:[%s269_s1 + $0x4] ss:$0 sm:$0xff]  ;;  %v31_v14 = vld [vmem:[#allocation2 + $0xa] sm:$0x3] }
  0x18   :  { %v129_v15 = vld [vmem:[%s269_s1 + $0x5] ss:$0 sm:$0xff]  ;;  %100 = vst.msk [vmem:[#allocation5 + $0x2] sm:$0x3] %vm98_vm0, %v91_v7  ;;  %101 = vst.msk [vmem:[#allocation5 + $0x4] sm:$0x3] %vm98_vm0, %v92_v8  ;;  %v94_v16 = vadd.f32 %v128_v13, %v30_v11 }
  0x19   :  { %v95_v17 = vadd.f32 %v129_v15, %v31_v14  ;;  %v32_v18 = vld [vmem:[#allocation2 + $0xc] sm:$0x3]  ;;  %v130_v19 = vld [vmem:[%s269_s1 + $0x6] ss:$0 sm:$0xff]  ;;  %v33_v20 = vld [vmem:[#allocation2 + $0xe] sm:$0x3] }
  0x1a   :  { %102 = vst.msk [vmem:[#allocation5 + $0x6] sm:$0x3] %vm98_vm0, %v93_v12  ;;  %v96_v21 = vadd.f32 %v130_v19, %v32_v18  ;;  %v131_v22 = vld [vmem:[%s269_s1 + $0x7] ss:$0 sm:$0xff]  ;;  %103 = vst.msk [vmem:[#allocation5 + $0x8] sm:$0x3] %vm98_vm0, %v94_v16 }
  0x1b   :  { %104 = vst.msk [vmem:[#allocation5 + $0xa] sm:$0x3] %vm98_vm0, %v95_v17  ;;  %v97_v23 = vadd.f32 %v131_v22, %v33_v20  ;;  %s158_s12 = scalar_lea.vmem %s113_s24, 256 }
  0x1c   :  { %105 = vst.msk [vmem:[#allocation5 + $0xc] sm:$0x3] %vm98_vm0, %v96_v21  ;;  %p159_p8 = scmp.ne.s32.totalorder %s113_s24, %s158_s12  ;;  %p164_p10 = scmp.lt.s32.totalorder %s158_s12, %s158_s12 }
  0x1d   :  { %106 = vst.msk [vmem:[#allocation5 + $0xe] sm:$0x3] %vm98_vm0, %v97_v23 }
  0x1e   :  { %p165_p11 = por %p164_p10, %p163_p9 }
  0x20   :  { %p166_p12 = pnand %p165_p11, %p159_p8 }
  0x22   :  { %169 = shalt.err (!%p166_p12)
}
  0x23   :  { %s170_s1 = scalar_lea.hbm %s270_s2, 256 }
  0x24   :  { %p171_p13 = scmp.ne.s32.totalorder %s270_s2, %s170_s1  ;;  %p174_p0 = scmp.lt.u32.totalorder %s170_s1, %s270_s2 }
  0x26   :  { %p176_p1 = pnand %p174_p0, %p171_p13 }
  0x28   :  { %179 = shalt.err (!%p176_p1)
}
  0x29   :  { %118 = dma.vmem_to_hbm [thread:$0]  %s113_s24, 256, %s270_s2, [#allocation4], %s185_s19, %s185_s19, %s186_s20  }
  0x2a   :  { %182 = dma.done.wait [#allocation4], 256  }
  0x2b   :  { %183 = vsyncadd [#allocation4], 4294967040 }
  0x2c   :  { %122 = vsyncpa [#allocation3], 1 }
  0x2d   :  { %123 = vsyncpa [#allocation4], 1 }

</bundles_post_ra>
